<compile_context>
chip_gen: v7x
topology: tpu7x:2x2x1
jax: 0.10.0
libtpu: 0.0.40
codegen_flags: <defaults>
</compile_context>

<pallas_src>
import jax
import jax.numpy as jnp
from jax.experimental import pallas as pl
from jax.experimental.pallas import tpu as pltpu


def _mish(v):
    # x * tanh(softplus(x));  tanh(softplus(x)) = (e^2 + 2e) / (e^2 + 2e + 2),
    # e = exp(x).  Exact algebraic identity -> a single EUP transcendental per
    # element.  Clamp so e^2 never overflows (for v >= 20 the factor is already
    # 1.0 in f32).
    e = jnp.exp(jnp.minimum(v, 20.0))
    num = e * (e + 2.0)
    return v * (num / (num + 2.0))


def _timestep_embed_kernel(t_ref, pk_ref, w2_ref, o_ref):
    t = t_ref[...]                      # (Bb, 1) f32
    w1 = pk_ref[0:1, :]                 # (1, E) == W1^T   (f32)
    b1 = pk_ref[1:2, :]                 # (1, E)
    b2 = pk_ref[2:3, :]                 # (1, E)

    # Linear(1, E): contraction depth K == 1 -> VPU broadcast outer product,
    # not a degenerate MXU matmul.  Mish kept in f32.
    h = _mish(t * w1 + b1)              # (Bb, E) f32

    # Linear(E, E): MXU matmul with f32 accumulation.  If W2 is stored as bf16
    # the single cast of h here feeds the native bf16 MXU path; for f32 W2 the
    # astype is a no-op.
    out = jnp.dot(h.astype(w2_ref.dtype), w2_ref[...],
                  preferred_element_type=jnp.float32)
    out = out + b2                      # (Bb, E) f32

    o_ref[...] = out.astype(o_ref.dtype)


def prepare_timestep_embed_params(w1, b1, w2, b2, *, w2_dtype=jnp.float32):
    """One-time parameter prep (hoisted out of the per-call hot path).

    Inputs use PyTorch layouts: w1 (E, 1), b1 (E,), w2 (E, E), b2 (E,).
    Returns:
      packed : (8, E) f32, rows = [W1^T, b1, b2, 0, ...]  (one constant DMA)
      w2_t   : (E, E) W2^T in `w2_dtype` (bf16 optional; halves W2 traffic)
    """
    E = w1.shape[0]
    packed = jnp.zeros((8, E), jnp.float32)
    packed = packed.at[0].set(w1.astype(jnp.float32)[:, 0])   # W1^T row
    packed = packed.at[1].set(b1.astype(jnp.float32))
    packed = packed.at[2].set(b2.astype(jnp.float32))
    w2_t = jnp.transpose(w2).astype(w2_dtype)                 # y = x @ W^T
    return packed, w2_t


def timestep_embed(t, prepared, *, block_b=1024, out_dtype=jnp.float32):
    """t: (B,) timesteps.  prepared: output of prepare_timestep_embed_params().
    Returns (B, E) embeddings in `out_dtype` (pass bf16 if the UNet consumer is
    bf16 to halve the dominant output HBM write)."""
    packed, w2_t = prepared
    E = packed.shape[1]
    B = t.shape[0]

    t_col = t.astype(jnp.float32).reshape(B, 1)   # == t.unsqueeze(-1).float()

    # Batch tile: multiple of 8 sublanes (or the full batch when B <= 8).
    # Force >= 2 grid steps when B > 8 so ("parallel",) can shard the batch
    # across both TensorCores on v7x.
    Bb = min(block_b, B)
    if B > 8:
        Bb = min(Bb, ((pl.cdiv(B, 2) + 7) // 8) * 8)
        Bb = max(8, (Bb // 8) * 8)
    # Keep the double-buffered working set well inside the default scoped-VMEM
    # budget (16 MiB v5e / 32 MiB v6e+v7x) instead of overriding vmem_limit_bytes.
    per_row = 2 * ((E + 128) * 4)                      # out + t blocks, x2 buffers
    fixed = 2 * E * E * w2_t.dtype.itemsize + 8 * E * 4
    while Bb > 8 and fixed + Bb * per_row > 12 * 1024 * 1024:
        Bb = max(8, (Bb // 2 // 8) * 8)
    grid_b = pl.cdiv(B, Bb)

    # Constant blocks: index never changes.  At large E single-buffer W2^T so
    # its VMEM footprint can go toward a larger batch tile instead.
    w2_mode = pl.Buffered(1) if E >= 512 else None

    return pl.pallas_call(
        _timestep_embed_kernel,
        out_shape=jax.ShapeDtypeStruct((B, E), out_dtype),
        grid_spec=pltpu.PrefetchScalarGridSpec(
            num_scalar_prefetch=0,
            grid=(grid_b,),
            in_specs=[
                pl.BlockSpec((Bb, 1), lambda i: (i, 0)),    # t, per batch tile
                pl.BlockSpec((8, E), lambda i: (0, 0)),     # [W1^T; b1; b2]
                pl.BlockSpec((E, E), lambda i: (0, 0),      # W2^T
                             pipeline_mode=w2_mode),
            ],
            out_specs=pl.BlockSpec((Bb, E), lambda i: (i, 0)),
        ),
        compiler_params=pltpu.CompilerParams(
            dimension_semantics=("parallel",)),
    )(t_col, packed, w2_t)


def _reference(t, params):
    """Pure-JAX reference matching the PyTorch module semantics."""
    w1, b1, w2, b2 = params
    x = t.astype(jnp.float32)[:, None]                 # t.unsqueeze(-1).float()
    h = x @ jnp.transpose(w1) + b1                     # Linear(1, E)
    h = h * jnp.tanh(jax.nn.softplus(h))               # Mish
    return h @ jnp.transpose(w2) + b2                  # Linear(E, E)


if __name__ == "__main__":
    key = jax.random.PRNGKey(0)
    B, E = 16, 128            # small, but E == 128 keeps stores lane-dense
    ks = jax.random.split(key, 5)

    # diffusion-style integer timesteps in [0, 1000)
    t = jax.random.randint(ks[0], (B,), 0, 1000).astype(jnp.float32)

    # deterministic synthetic parameters (PyTorch layouts)
    w1 = 0.02 * jax.random.normal(ks[1], (E, 1), jnp.float32)   # Linear(1, E).weight
    b1 = 0.10 * jax.random.normal(ks[2], (E,), jnp.float32)
    w2 = 0.10 * jax.random.normal(ks[3], (E, E), jnp.float32)   # Linear(E, E).weight
    b2 = 0.10 * jax.random.normal(ks[4], (E,), jnp.float32)
    params = (w1, b1, w2, b2)

    # One-time prep (hoisted off the hot path).
    prepared = prepare_timestep_embed_params(*params)

    out = jax.block_until_ready(timestep_embed(t, prepared))
    ref = _reference(t, params)
    assert out.shape == ref.shape == (B, E), (out.shape, ref.shape)
    err = float(jnp.max(jnp.abs(out - ref)))
    tol = 1e-4 * (1.0 + float(jnp.max(jnp.abs(ref))))
    assert err < tol, f"max abs err {err} (tol {tol})"

    # Exercise the partial last-tile path (B % Bb != 0) — handled in-kernel now,
    # no wrapper pad/slice.
    t_odd = jax.random.randint(key, (13,), 0, 1000).astype(jnp.float32)
    out_odd = jax.block_until_ready(timestep_embed(t_odd, prepared))
    ref_odd = _reference(t_odd, params)
    err_odd = float(jnp.max(jnp.abs(out_odd - ref_odd)))
    assert err_odd < tol, f"partial-tile max abs err {err_odd} (tol {tol})"

    print("KERNEL_OK")
</pallas_src>

<mosaic_0001>
module attributes {stable_mosaic.version = 11 : i64} {
  func.func @_timestep_embed_kernel(%arg0: i32, %arg1: memref<8x1xf32, #tpu.memory_space<vmem>>, %arg2: memref<8x128xf32, #tpu.memory_space<vmem>>, %arg3: memref<128x128xf32, #tpu.memory_space<vmem>>, %arg4: memref<8x128xf32, #tpu.memory_space<vmem>>) attributes {dimension_semantics = [#tpu.dimension_semantics<parallel>], iteration_bounds = array<i64: 2>, scalar_prefetch = 0 : i64, scratch_operands = 0 : i64, tpu.core_type = #tpu.core_type<tc>, window_params = [{transform_indices = @transform_0, window_bounds = array<i64: 8, 1>}, {pipeline_mode = #tpu.pipeline_mode<synchronous>, transform_indices = @transform_1, window_bounds = array<i64: 8, 128>}, {pipeline_mode = #tpu.pipeline_mode<synchronous>, transform_indices = @transform_2, window_bounds = array<i64: 128, 128>}, {transform_indices = @transform_3, window_bounds = array<i64: 8, 128>}]} {
    %c0 = arith.constant 0 : index
    %c0_0 = arith.constant 0 : index
    %0 = vector.load %arg1[%c0, %c0_0] : memref<8x1xf32, #tpu.memory_space<vmem>>, vector<8x1xf32>
    %c0_1 = arith.constant 0 : index
    %c0_2 = arith.constant 0 : index
    %1 = vector.load %arg2[%c0_1, %c0_2] : memref<8x128xf32, #tpu.memory_space<vmem>>, vector<1x128xf32>
    %c1 = arith.constant 1 : index
    %c0_3 = arith.constant 0 : index
    %2 = vector.load %arg2[%c1, %c0_3] : memref<8x128xf32, #tpu.memory_space<vmem>>, vector<1x128xf32>
    %c2 = arith.constant 2 : index
    %c0_4 = arith.constant 0 : index
    %3 = vector.load %arg2[%c2, %c0_4] : memref<8x128xf32, #tpu.memory_space<vmem>>, vector<1x128xf32>
    %4 = vector.broadcast %0 : vector<8x1xf32> to vector<8x128xf32>
    %5 = vector.broadcast %1 : vector<1x128xf32> to vector<8x128xf32>
    %6 = arith.mulf %4, %5 : vector<8x128xf32>
    %7 = vector.broadcast %2 : vector<1x128xf32> to vector<8x128xf32>
    %8 = arith.addf %6, %7 : vector<8x128xf32>
    %cst = arith.constant 2.000000e+01 : f32
    %9 = vector.broadcast %cst : f32 to vector<8x128xf32>
    %10 = arith.minimumf %8, %9 : vector<8x128xf32>
    %11 = math.exp %10 : vector<8x128xf32>
    %cst_5 = arith.constant 2.000000e+00 : f32
    %12 = vector.broadcast %cst_5 : f32 to vector<8x128xf32>
    %13 = arith.addf %11, %12 : vector<8x128xf32>
    %14 = arith.mulf %11, %13 : vector<8x128xf32>
    %cst_6 = arith.constant 2.000000e+00 : f32
    %15 = vector.broadcast %cst_6 : f32 to vector<8x128xf32>
    %16 = arith.addf %14, %15 : vector<8x128xf32>
    %17 = arith.divf %14, %16 : vector<8x128xf32>
    %18 = arith.mulf %8, %17 : vector<8x128xf32>
    %c0_7 = arith.constant 0 : index
    %c0_8 = arith.constant 0 : index
    %19 = vector.load %arg3[%c0_7, %c0_8] : memref<128x128xf32, #tpu.memory_space<vmem>>, vector<128x128xf32>
    %cst_9 = arith.constant dense<0.000000e+00> : vector<8x128xf32>
    %20 = tpu.matmul %18, %19, %cst_9 {dimension_numbers = #tpu.dot_dimension_numbers<[1], [0], [0], [1], [0, 0, 1, 1], [], []>} : vector<8x128xf32>, vector<128x128xf32>, vector<8x128xf32> -> vector<8x128xf32>
    %21 = vector.broadcast %3 : vector<1x128xf32> to vector<8x128xf32>
    %22 = arith.addf %20, %21 : vector<8x128xf32>
    %c0_10 = arith.constant 0 : index
    %c0_11 = arith.constant 0 : index
    %23 = vector.load %arg4[%c0_10, %c0_11] : memref<8x128xf32, #tpu.memory_space<vmem>>, vector<8x128xf32>
    tpu.vector_store %arg4[%c0_10, %c0_11], %22 {strides = array<i32>} : memref<8x128xf32, #tpu.memory_space<vmem>>, vector<8x128xf32>,
    return
  }
  func.func @transform_0(%arg0: i32) -> (i32, i32) {
    %c0_i32 = arith.constant 0 : i32
    %c0_i32_0 = arith.constant 0 : i32
    return %arg0, %c0_i32 : i32, i32
  }
  func.func @transform_1(%arg0: i32) -> (i32, i32) {
    %c0_i32 = arith.constant 0 : i32
    %c0_i32_0 = arith.constant 0 : i32
    %c0_i32_1 = arith.constant 0 : i32
    return %c0_i32, %c0_i32_0 : i32, i32
  }
  func.func @transform_2(%arg0: i32) -> (i32, i32) {
    %c0_i32 = arith.constant 0 : i32
    %c0_i32_0 = arith.constant 0 : i32
    %c0_i32_1 = arith.constant 0 : i32
    return %c0_i32, %c0_i32_0 : i32, i32
  }
  func.func @transform_3(%arg0: i32) -> (i32, i32) {
    %c0_i32 = arith.constant 0 : i32
    %c0_i32_0 = arith.constant 0 : i32
    return %arg0, %c0_i32 : i32, i32
  }
}

</mosaic_0001>

<bundles_post_ra>
// kernel: tpu_custom_call.1
= control target key start
LH: loop header
LB: loop body
LE: loop exit
PB: predicated region body
PF: predicated region fallthrough
CT: control target
= control target key end

     0   :  { %8 = vsyncpa [#allocation3], 0  ;;  %s805_s0 = inlined_call_operand.vmem [shape: f32[16,1], index: 0, kind: input, shape index: {}]   ;;  %s806_s1 = inlined_call_operand.vmem [shape: f32[8,128], index: 1, kind: input, shape index: {}]   ;;  %s807_s2 = inlined_call_operand.hbm [shape: f32[128,128], index: 2, kind: input, shape index: {}]   ;;  %s808_s3 = inlined_call_operand.hbm [shape: f32[16,128], index: 3, kind: output, shape index: {}]  }
   0x1   :  { %9 = vsyncpa [#allocation4], 0 }
   0x2   :  { %11 = vsyncpa [#allocation4 + $0x1], 0  ;;  %s661_s12 = smov 0   ;;  %s663_s13 = smov 0  }
   0x3   :  { %s665_s14 = smov 0   ;;  %s667_s15 = smov 0  }
   0x4 LB: > { %s682_s16 = sadd.s32 4294967295, %s631_s15   ;;  %s385_s17 = sadd.s32 4294967294, %s631_s15   ;;  %s631_s15 = sphi %s667_s15, %s824_s15   ;;  %s627_s14 = sphi %s665_s14, %s823_s14   ;;  %s623_s13 = sphi %s663_s13, %s822_s13   ;;  %s619_s12 = sphi %s661_s12, %s821_s12  }
   0x5   : > { %s686_s18 = sadd.s32 1, %s631_s15   ;;  %s92_s19 = sadd.s32 1, %s627_s14 }
   0x6   : > { %s89_s20 = ssub.s32 %s631_s15, %s686_s18  ;;  %p102_p0 = scmp.ne.s32.totalorder %s627_s14, %s623_s13 }
   0x7   : > { %p90_p1 = scmp.eq.s32.totalorder %s89_s20, 0  ;;  %p103_p2 = scmp.eq.s32.totalorder %s682_s16, 1 }
   0x8   : > { %p108_p3 = scmp.ne.s32.totalorder %s623_s13, %s619_s12  ;;  %p109_p4 = scmp.eq.s32.totalorder %s385_s17, 1 }
   0x9   : > { %s697_s21 = scalar_select %p90_p1, %s627_s14, %s92_s19  }
   0xa   : > { %p699_p5 = por %p103_p2, %p102_p0  ;;  %p703_p6 = por %p109_p4, %p108_p3 }
   0xb   : > { %p386_p7 = scmp.ge.s32.totalorder %s631_s15, 1  ;;  %p116_p8 = scmp.lt.s32.totalorder %s631_s15, 3 }
   0xc   : > { %s812_s22 = scalar_select %p699_p5, 1, 0 }
   0xd   : > { %s813_s23 = scalar_select %p703_p6, 1, 0 }
   0xe   : > { %p809_p9 = scmp.eq.s32.totalorder %s682_s16, 0  ;;  %p710_p10 = pnand %p386_p7, %p116_p8 }
   0xf   : > { %s633_s25 = smov [#allocation2]   ;;  %s537_s30 = scalar_lea.hbm %s807_s2, 2048 }
  0x10   : > { %s814_s24 = scalar_select %p710_p10, 1, 0 }
  0x11   : > { %s131_s26 = sshll.u32 %s633_s25, 4  ;;  %p482_p11 = pneg %p710_p10  ;;  %s132_s26 = int_to_ptr.vmem [resolvable:$true] %s131_s26 }
  0x12   : > { %p538_p13 = scmp.ne.s32.totalorder %s807_s2, %s537_s30  ;;  %p544_p3 = scmp.lt.u32.totalorder %s537_s30, %s807_s2 }
  0x13   : > { %p718_p12 = pnand %p809_p9, %p482_p11 }
  0x15   : > { %p539_p0 = pneg %p718_p12 }
  0x17   : > { %p540_p1 = pnand %p539_p0, %p538_p13 }
  0x19   : > { %p541_p2 = pneg %p540_p1 }
  0x1b   : > { %p546_p4 = pnand %p544_p3, %p541_p2 }
  0x1d   : > { %549 = shalt.err (!%p546_p4)
}
  0x1e   : > { %s550_s8 = scalar_lea.vmem %s132_s26, 2048  ;;  %p558_p9 = scmp.lt.s32.totalorder %s132_s26, %s132_s26 }
  0x1f   : > { %p551_p7 = scmp.ne.s32.totalorder %s132_s26, %s550_s8  ;;  %p559_p6 = scmp.lt.s32.totalorder %s550_s8, %s550_s8 }
  0x21   : > { %p553_p8 = pnand %p551_p7, %p539_p0  ;;  %p560_p5 = por %p559_p6, %p558_p9 }
  0x23   : > { %p554_p11 = pneg %p553_p8 }
  0x25   : > { %p561_p10 = pnand %p560_p5, %p554_p11 }
  0x27   : > { %564 = shalt.err (!%p561_p10)
}
  0x28   : > { %s634_s9 = smov 128   ;;  %s635_s10 = smov 8  }
  0x29   : > { %485 = dma.hbm_to_vmem [thread:$0]  (!%p718_p12), %s807_s2, 2048, %s132_s26, [#allocation3], %s634_s9, %s634_s9, %s635_s10  }
  0x2a   : > { %p816_p13 = scmp.ne.s32.totalorder %s814_s24, 0 }
  0x2b   : > { %p817_p1 = scmp.eq.s32.totalorder (!%p816_p13), %s682_s16, 0 }
  0x2c   : > { %154 = sbr.rel (%p816_p13) target bundleno = 455 (0x1c7), region = 32 }
  0x33   : > { %610 = dma.done.wait (%p817_p1), [#allocation3], 2048   ;;  %p818_p0 = pmov %p817_p1 }
  0x34   : > { %p177_p5 = scmp.lt.s32.totalorder %s682_s16, 1  ;;  %v636_v0 = vmov 0   ;;  %v209_v2 = vld [vmem:[#allocation2] sm:$0xff]  ;;  %v210_v3 = vld [vmem:[#allocation2 + $0x8] sm:$0xff]  ;;  %v637_v5 = vmov 0.0|0.0   ;;  %v211_v6 = vld [vmem:[#allocation2 + $0x10] sm:$0xff] }
  0x35   : > { %612 = vsyncadd (%p818_p0), [#allocation3], 4294965248  ;;  %532 = vset.pattern.permute.xlu0 %v636_v0  ;;  %v453_v4 = vpack.c.bf16 %v210_v3, %v209_v2  ;;  %452 = vmatprep.subr.bf16.mxu0 %v637_v5  ;;  %v212_v7 = vld [vmem:[#allocation2 + $0x18] sm:$0xff]  ;;  %vm638_vm0 = vmmov 0   ;;  %v639_v9 = vmov 0.0   ;;  %v213_v10 = vld [vmem:[#allocation2 + $0x20] sm:$0xff] }
  0x36   : > { %s178_s19 = scalar_select %p177_p5, %s682_s16, 1  ;;  %v456_v8 = vpack.c.bf16 %v212_v7, %v211_v6  ;;  %449 = vmatprep.mubr.msk.f32.mxu0 %vm638_vm0, %v639_v9  ;;  %v214_v11 = vld [vmem:[#allocation2 + $0x28] sm:$0xff]  ;;  %v215_v13 = vld [vmem:[#allocation2 + $0x30] sm:$0xff]  ;;  %v216_v14 = vld [vmem:[#allocation2 + $0x38] sm:$0xff] }
  0x37   : > { %454 = vmatpush3.bf16.msra.mxu0 %v453_v4  ;;  %v459_v12 = vpack.c.bf16 %v214_v11, %v213_v10  ;;  %v462_v15 = vpack.c.bf16 %v216_v14, %v215_v13  ;;  %v217_v16 = vld [vmem:[#allocation2 + $0x40] sm:$0xff]  ;;  %v218_v17 = vld [vmem:[#allocation2 + $0x48] sm:$0xff]  ;;  %v219_v19 = vld [vmem:[#allocation2 + $0x50] sm:$0xff]  ;;  %s174_s4 = sand.u32 1, %s623_s13   ;;  %s397_s8 = sshll.u32 %s682_s16, 7 }
  0x38   : > { %s392_s20 = sshll.u32 %s178_s19, 3  ;;  %455 = vmatprep.subr.bf16.mxu0 %v637_v5  ;;  %v465_v18 = vpack.c.bf16 %v218_v17, %v217_v16  ;;  %v220_v20 = vld [vmem:[#allocation2 + $0x58] sm:$0xff]  ;;  %v221_v22 = vld [vmem:[#allocation2 + $0x60] sm:$0xff]  ;;  %v222_v23 = vld [vmem:[#allocation2 + $0x68] sm:$0xff]  ;;  %s391_s5 = sshll.u32 %s174_s4, 3 }
  0x39   : > { %s180_s26 = scalar_lea.vmem %s805_s0, %s392_s20  ;;  %v468_v21 = vpack.c.bf16 %v220_v20, %v219_v19  ;;  %v471_v24 = vpack.c.bf16 %v222_v23, %v221_v22  ;;  %v223_v25 = vld [vmem:[#allocation2 + $0x70] sm:$0xff]  ;;  %v224_v26 = vld [vmem:[#allocation2 + $0x78] sm:$0xff]  ;;  %v393_v28 = vld [vmem:[%s806_s1] ss:$0 sm:$0xff]  ;;  %s176_s9 = scalar_lea.vmem [#allocation5], %s391_s5 }
  0x3a   : > { %v181_v1 = vld [vmem:[%s180_s26] sm:$0xff]  ;;  %v474_v27 = vpack.c.bf16 %v224_v26, %v223_v25  ;;  %s314_s10 = sshll.u32 %s176_s9, 4  ;;  %s763_s19 = scalar_lea.hbm %s808_s3, %s397_s8  ;;  %s765_s10 = int_to_ptr.vmem [resolvable:$true] %s314_s10 }
  0x3b   : > { %187 = vperm.xlu0 %532, %v181_v1   ;;  %457 = vmatpush3.bf16.msra.mxu0 %v456_v8  ;;  %v394_v29 = vld [vmem:[%s806_s1 + $0x1] ss:$0 sm:$0xff]  ;;  %v395_v42 = vld [vmem:[%s806_s1 + $0x2] ss:$0 sm:$0xff]  ;;  %s301_s20 = scalar_lea.sflag [#allocation4], %s174_s4  ;;  %s565_s25 = scalar_lea.vmem %s765_s10, 128 }
  0x3c   : > { %458 = vmatprep.subr.bf16.mxu0 %v637_v5  ;;  %p566_p6 = scmp.ne.s32.totalorder %s765_s10, %s565_s25  ;;  %p819_p9 = scmp.ne.s32.totalorder %s812_s22, 0 }
  0x3d   : > { %s640_s16 = smov [#allocation5]  }
  0x3e   : > { %p567_p10 = pnand %p566_p6, %p819_p9  ;;  %s569_s27 = sshll.u32 %s640_s16, 4  ;;  %s570_s27 = int_to_ptr.vmem [resolvable:$false] %s569_s27 }
  0x3f   : > { %460 = vmatpush3.bf16.msra.mxu0 %v459_v12  ;;  %s571_s26 = scalar_lea.vmem %s570_s27, 256  ;;  %p572_p2 = scmp.lt.s32.totalorder %s765_s10, %s570_s27 }
  0x40   : > { %461 = vmatprep.subr.bf16.mxu0 %v637_v5  ;;  %p568_p12 = pneg %p567_p10  ;;  %p573_p3 = scmp.lt.s32.totalorder %s571_s26, %s565_s25 }
  0x42   : > { %p574_p4 = por %p573_p3, %p572_p2 }
  0x43   : > { %463 = vmatpush3.bf16.msra.mxu0 %v462_v15 }
  0x44   : > { %464 = vmatprep.subr.bf16.mxu0 %v637_v5  ;;  %p575_p7 = pnand %p574_p4, %p568_p12 }
  0x47   : > { %466 = vmatpush3.bf16.msra.mxu0 %v465_v18 }
  0x48   : > { %467 = vmatprep.subr.bf16.mxu0 %v637_v5 }
  0x4b   : > { %469 = vmatpush3.bf16.msra.mxu0 %v468_v21 }
  0x4c   : > { %470 = vmatprep.subr.bf16.mxu0 %v637_v5 }
  0x4f   : > { %472 = vmatpush3.bf16.msra.mxu0 %v471_v24 }
  0x50   : > { %473 = vmatprep.subr.bf16.mxu0 %v637_v5 }
  0x53   : > { %475 = vmatpush3.bf16.msra.mxu0 %v474_v27 }
  0xba   : > { %v188_v30 = vpop.permute.xlu0 %187 }
  0xbb   : > { %v194_v31 = vmul.f32 %v393_v28, %v188_v30 }
  0xbd   : > { %v199_v32 = vadd.f32 %v394_v29, %v194_v31 }
  0xbf   : > { %v200_v33 = vmin.f32 %v199_v32, 20.0 }
  0xc1   : > { %v201_v34 = vmul.f32 1.442695, %v200_v33 }
  0xc3   : > { %533 = vpow2.f32 %v201_v34 }
  0xcd   : > { %v534_v35 = vpop.eup %533 }
  0xce   : > { %v203_v36 = vadd.f32 2.0, %v534_v35 }
  0xd0   : > { %v204_v37 = vmul.f32 %v534_v35, %v203_v36 }
  0xd2   : > { %v205_v38 = vadd.f32 2.0, %v204_v37 }
  0xd4   : > { %535 = vrcp.f32 %v205_v38 }
  0xde   : > { %v536_v39 = vpop.eup %535 }
  0xdf   : > { %v207_v40 = vmul.f32 %v536_v39, %v204_v37 }
  0xe1   : > { %v208_v41 = vmul.f32 %v207_v40, %v199_v32 }
  0xe3   : > { %450 = vmatmul.mubr.f32.vlgmr.msra.gmra.mrb[0].mxu0 %v208_v41 }
 0x1b6   : > { %v295_v43 = vpop.f32.mrb[0].mxu0 }
 0x1b7   : > { %v296_v44 = vadd.f32 %v395_v42, %v295_v43  ;;  %v451_v45 = vpop.f32.mrb[1].mxu0 }
 0x1b9   : > { %299 = vst [vmem:[%s176_s9] sm:$0xff] %v296_v44 }
 0x1ba   : > { %578 = shalt.err (!%p575_p7)
}
 0x1bb   : > { %s579_s24 = scalar_lea.hbm %s763_s19, 128  ;;  %s583_s30 = scalar_lea.hbm %s808_s3, 256 }
 0x1bc   : > { %p580_p8 = scmp.ne.s32.totalorder %s763_s19, %s579_s24  ;;  %p584_p1 = scmp.lt.u32.totalorder %s763_s19, %s808_s3 }
 0x1bd   : > { %p585_p0 = scmp.lt.u32.totalorder %s583_s30, %s579_s24  ;;  %p587_p6 = scmp.lt.u32.totalorder %s579_s24, %s763_s19 }
 0x1be   : > { %p581_p11 = pnand %p580_p8, %p819_p9 }
 0x1bf   : > { %p586_p5 = por %p585_p0, %p584_p1 }
 0x1c0   : > { %p582_p13 = pneg %p581_p11 }
 0x1c1   : > { %p588_p10 = por %p587_p6, %p586_p5 }
 0x1c3   : > { %p589_p12 = pnand %p588_p10, %p582_p13 }
 0x1c5   : > { %592 = shalt.err (!%p589_p12)
}
 0x1c6   : > { %480 = dma.vmem_to_hbm [thread:$0]  (%p819_p9), %s765_s10, 128, %s763_s19, %s301_s20  }
 0x1c7 PF: > { %p492_p2 = scmp.ge.s32.totalorder %s631_s15, 2  ;;  %s326_s6 = sand.u32 1, %s619_s12  }
 0x1c8   : > { %p820_p3 = scmp.ne.s32.totalorder %s813_s23, 0  ;;  %s327_s7 = scalar_lea.sflag [#allocation4], %s326_s6 }
 0x1ca   : > { %p487_p4 = pnand %p492_p2, %p820_p3 }
 0x1cc   : > { %614 = dma.done.wait (!%p487_p4), %s327_s7, 128  }
 0x1cd   : > { %616 = vsyncadd (!%p487_p4), %s327_s7, 4294967168  ;;  %p14_p7 = scmp.ge.s32.totalorder %s686_s18, 4   ;;  %s821_s12 = smov %s623_s13 }
 0x1ce   : > { %s822_s13 = smov %s627_s14  ;;  %s823_s14 = smov %s697_s21 }
 0x1cf   : > { %s824_s15 = smov %s686_s18  ;;  %16 = sbr.rel (!%p14_p7) target bundleno = 4 (0x4), region = 72 }
 0x1d6   :  { %332 = vsyncpa [#allocation3], 1 }
 0x1d7   :  { %334 = vsyncpa [#allocation3 + $0x1], 1 }
 0x1d8   :  { %335 = vsyncpa [#allocation4], 1 }
 0x1d9   :  { %337 = vsyncpa [#allocation4 + $0x1], 1 }

</bundles_post_ra>
